<compile_context>
chip_gen: v7x
topology: tpu7x:2x2x1
jax: 0.10.0
libtpu: 0.0.40
codegen_flags: <defaults>
</compile_context>

<pallas_src>
import jax
import jax.numpy as jnp
import numpy as np
from jax.experimental import pallas as pl
from jax.experimental.pallas import tpu as pltpu


# --------------------------------------------------------------------------- kernel
def fused_encoder_kernel(q0_ref, kv0_ref, wv_ref, wfc_ref,
                         w1_ref, b1_ref, w2_ref, b2_ref, out_ref):
    """One grid step == one EncoderLayer.  out_ref is VMEM-resident across the grid
    (its index_map is constant) and carries the activation between layers."""
    layer = pl.program_id(0)
    f32 = jnp.float32

    @pl.when(layer == 0)
    def _():
        # Layer 0: softmax over the single key position is identically 1, so the
        # scaled-dot-product attention output is exactly V.  mha = V @ wfc + residual.
        x = q0_ref[...].astype(f32)                                        # (bs, d_model)
        v = jnp.dot(kv0_ref[...].astype(f32), wv_ref[...],
                    preferred_element_type=f32)                            # (bs, H*d_v)
        out_ref[...] = jnp.dot(v, wfc_ref[...],
                               preferred_element_type=f32) + x             # (bs, d_model)

    # For layer > 0 the k/v slice is empty in the PyTorch module, so the attention
    # output is zero and mha == previous layer's activation (already in out_ref).
    mha = out_ref[...]

    # Position-wise feed forward + residual (dropout = identity).
    h = jnp.dot(mha, w1_ref[...], preferred_element_type=f32) + b1_ref[...]
    h = jnp.maximum(h, 0.0)
    ffn = jnp.dot(h, w2_ref[...], preferred_element_type=f32) + b2_ref[...]
    out_ref[...] = (ffn + mha).astype(out_ref.dtype)


# --------------------------------------------------------------------------- wrapper
def encoder_forward(feats_embedding, layer_params, *, n_head, d_k, d_v,
                    return_attns=False):
    """feats_embedding: (bs, num_views, d_model).  norm=False / eval-mode path."""
    bs, num_views, d_model = feats_embedding.shape
    n_layers = len(layer_params)
    hdv = layer_params[0]["wv"].shape[-1]
    d_inner = layer_params[0]["w1"].shape[-1]

    q0 = feats_embedding[:, 0, :]                       # (bs, d_model)
    kv0 = feats_embedding[:, 1, :]                      # (bs, d_model)

    # Stack per-layer weights -> streamed one layer per grid step.
    wv_s = jnp.stack([p["wv"] for p in layer_params])   # (L, d_model, H*d_v)
    wfc_s = jnp.stack([p["wfc"] for p in layer_params]) # (L, H*d_v, d_model)
    w1_s = jnp.stack([p["w1"] for p in layer_params])   # (L, d_model, d_inner)
    b1_s = jnp.stack([p["b1"] for p in layer_params])   # (L, 1, d_inner)
    w2_s = jnp.stack([p["w2"] for p in layer_params])   # (L, d_inner, d_model)
    b2_s = jnp.stack([p["b2"] for p in layer_params])   # (L, 1, d_model)

    vec_spec = pl.BlockSpec((bs, d_model), lambda l: (0, 0))   # fetched once, reused

    def wspec(d0, d1):
        # Leading (layer) dim squeezed out of the kernel view; index_map streams layer l.
        return pl.BlockSpec((None, d0, d1), lambda l: (l, 0, 0))

    out2d = pl.pallas_call(
        fused_encoder_kernel,
        out_shape=jax.ShapeDtypeStruct((bs, d_model), jnp.float32),
        grid=(n_layers,),
        in_specs=[vec_spec, vec_spec,
                  wspec(d_model, hdv), wspec(hdv, d_model),
                  wspec(d_model, d_inner), wspec(1, d_inner),
                  wspec(d_inner, d_model), wspec(1, d_model)],
        out_specs=pl.BlockSpec((bs, d_model), lambda l: (0, 0)),
        compiler_params=pltpu.CompilerParams(
            dimension_semantics=("arbitrary",)),          # layers are sequential
    )(q0, kv0, wv_s, wfc_s, w1_s, b1_s, w2_s, b2_s)

    enc_output = out2d[:, None, :]                        # (bs, 1, d_model)

    if return_attns:
        # Layer 0: softmax over one key == 1 -> all-ones attention.
        # Layer > 0: PyTorch slices an empty k/v -> zero-width attention tensor.
        attn_list = [jnp.ones((bs, n_head, 1, 1), jnp.float32) if i == 0
                     else jnp.zeros((bs, n_head, 1, 0), jnp.float32)
                     for i in range(n_layers)]
        return enc_output, attn_list
    return (enc_output,)


# --------------------------------------------------------------------------- params / reference
def init_layer_params(key, n_head, d_k, d_v, d_model, d_inner):
    ks = jax.random.split(key, 10)
    s = 0.1
    return {
        # wq/wk are kept (and used in the reference) purely to demonstrate that the
        # forward output is independent of them; the kernel does not consume them.
        "wq": jax.random.normal(ks[0], (d_model, n_head * d_k), jnp.float32) * s,
        "wk": jax.random.normal(ks[1], (d_model, n_head * d_k), jnp.float32) * s,
        "wv": jax.random.normal(ks[2], (d_model, n_head * d_v), jnp.float32) * s,
        "wfc": jax.random.normal(ks[3], (n_head * d_v, d_model), jnp.float32) * s,
        "w1": jax.random.normal(ks[4], (d_model, d_inner), jnp.float32) * s,
        "b1": jax.random.normal(ks[5], (1, d_inner), jnp.float32) * s,
        "w2": jax.random.normal(ks[6], (d_inner, d_model), jnp.float32) * s,
        "b2": jax.random.normal(ks[7], (1, d_model), jnp.float32) * s,
    }


def ref_encoder(feats, layer_params, n_head, d_k, d_v):
    """Pure-JAX literal translation of Encoder.forward (eval mode, norm=False)."""
    enc = feats
    for p in layer_params:
        q_in = enc[:, 0:1, :]                          # (bs, 1, d_model)
        kv_in = enc[:, 1:2, :]                         # (bs, len_k, d_model); len_k may be 0
        bs, len_q, d_model = q_in.shape
        len_k = kv_in.shape[1]
        if len_k > 0:
            q = (q_in @ p["wq"]).reshape(bs, len_q, n_head, d_k).transpose(0, 2, 1, 3)
            k = (kv_in @ p["wk"]).reshape(bs, len_k, n_head, d_k).transpose(0, 2, 1, 3)
            v = (kv_in @ p["wv"]).reshape(bs, len_k, n_head, d_v).transpose(0, 2, 1, 3)
            scores = (q / (d_k ** 0.5)) @ jnp.swapaxes(k, -1, -2)
            attn = jax.nn.softmax(scores, axis=-1)
            o = (attn @ v).transpose(0, 2, 1, 3).reshape(bs, len_q, n_head * d_v)
        else:
            # Empty k/v slice -> matmul over zero-length contraction -> zeros.
            o = jnp.zeros((bs, len_q, n_head * d_v), jnp.float32)
        mha = o @ p["wfc"] + q_in
        h = jnp.maximum(mha @ p["w1"] + p["b1"], 0.0)
        enc = h @ p["w2"] + p["b2"] + mha
    return enc


# --------------------------------------------------------------------------- main
if __name__ == "__main__":
    n_layers, n_head, d_k, d_v = 2, 4, 8, 8
    d_model, d_inner = 32, 64
    bs, num_views = 2, 8

    key = jax.random.PRNGKey(0)
    k_in, k_p = jax.random.split(key)
    feats = jax.random.normal(k_in, (bs, num_views, d_model), jnp.float32)
    layer_params = [init_layer_params(jax.random.fold_in(k_p, i),
                                      n_head, d_k, d_v, d_model, d_inner)
                    for i in range(n_layers)]

    (enc_out,) = encoder_forward(feats, layer_params, n_head=n_head, d_k=d_k, d_v=d_v)
    enc_out = jax.block_until_ready(enc_out)

    ref_out = ref_encoder(feats, layer_params, n_head, d_k, d_v)
    np.testing.assert_allclose(np.asarray(enc_out), np.asarray(ref_out),
                               rtol=1e-5, atol=1e-5)
    assert enc_out.shape == (bs, 1, d_model)

    # return_attns path (constants, produced host-side; no lane-sparse kernel stores)
    _, attns = encoder_forward(feats, layer_params, n_head=n_head, d_k=d_k, d_v=d_v,
                               return_attns=True)
    assert attns[0].shape == (bs, n_head, 1, 1)

    print("KERNEL_OK")
</pallas_src>

<mosaic_0001>
module attributes {stable_mosaic.version = 11 : i64} {
  func.func @fused_encoder_kernel(%arg0: i32, %arg1: memref<2x32xf32, #tpu.memory_space<vmem>>, %arg2: memref<2x32xf32, #tpu.memory_space<vmem>>, %arg3: memref<1x32x32xf32, #tpu.memory_space<vmem>>, %arg4: memref<1x32x32xf32, #tpu.memory_space<vmem>>, %arg5: memref<1x32x64xf32, #tpu.memory_space<vmem>>, %arg6: memref<1x1x64xf32, #tpu.memory_space<vmem>>, %arg7: memref<1x64x32xf32, #tpu.memory_space<vmem>>, %arg8: memref<1x1x32xf32, #tpu.memory_space<vmem>>, %arg9: memref<2x32xf32, #tpu.memory_space<vmem>>) attributes {dimension_semantics = [#tpu.dimension_semantics<arbitrary>], iteration_bounds = array<i64: 2>, scalar_prefetch = 0 : i64, scratch_operands = 0 : i64, tpu.core_type = #tpu.core_type<tc>, window_params = [{pipeline_mode = #tpu.pipeline_mode<synchronous>, transform_indices = @transform_0, window_bounds = array<i64: 2, 32>}, {pipeline_mode = #tpu.pipeline_mode<synchronous>, transform_indices = @transform_1, window_bounds = array<i64: 2, 32>}, {transform_indices = @transform_2, window_bounds = array<i64: 1, 32, 32>}, {transform_indices = @transform_3, window_bounds = array<i64: 1, 32, 32>}, {transform_indices = @transform_4, window_bounds = array<i64: 1, 32, 64>}, {transform_indices = @transform_5, window_bounds = array<i64: 1, 1, 64>}, {transform_indices = @transform_6, window_bounds = array<i64: 1, 64, 32>}, {transform_indices = @transform_7, window_bounds = array<i64: 1, 1, 32>}, {pipeline_mode = #tpu.pipeline_mode<synchronous>, transform_indices = @transform_8, window_bounds = array<i64: 2, 32>}]} {
    %c0_i32 = arith.constant 0 : i32
    %0 = arith.cmpi eq, %arg0, %c0_i32 : i32
    %1 = arith.extui %0 : i1 to i32
    %c0_i32_0 = arith.constant 0 : i32
    %2 = arith.cmpi ne, %1, %c0_i32_0 : i32
    scf.if %2 {
      %c0_18 = arith.constant 0 : index
      %c0_19 = arith.constant 0 : index
      %22 = vector.load %arg1[%c0_18, %c0_19] : memref<2x32xf32, #tpu.memory_space<vmem>>, vector<2x32xf32>
      %c0_20 = arith.constant 0 : index
      %c0_21 = arith.constant 0 : index
      %23 = vector.load %arg2[%c0_20, %c0_21] : memref<2x32xf32, #tpu.memory_space<vmem>>, vector<2x32xf32>
      %c0_22 = arith.constant 0 : index
      %c0_23 = arith.constant 0 : index
      %c0_24 = arith.constant 0 : index
      %24 = vector.load %arg3[%c0_22, %c0_23, %c0_24] : memref<1x32x32xf32, #tpu.memory_space<vmem>>, vector<1x32x32xf32>
      %25 = vector.shape_cast %24 : vector<1x32x32xf32> to vector<32x32xf32>
      %cst_25 = arith.constant dense<0.000000e+00> : vector<2x32xf32>
      %26 = tpu.matmul %23, %25, %cst_25 {dimension_numbers = #tpu.dot_dimension_numbers<[1], [0], [0], [1], [0, 0, 1, 1], [], []>} : vector<2x32xf32>, vector<32x32xf32>, vector<2x32xf32> -> vector<2x32xf32>
      %c0_26 = arith.constant 0 : index
      %c0_27 = arith.constant 0 : index
      %c0_28 = arith.constant 0 : index
      %27 = vector.load %arg4[%c0_26, %c0_27, %c0_28] : memref<1x32x32xf32, #tpu.memory_space<vmem>>, vector<1x32x32xf32>
      %28 = vector.shape_cast %27 : vector<1x32x32xf32> to vector<32x32xf32>
      %cst_29 = arith.constant dense<0.000000e+00> : vector<2x32xf32>
      %29 = tpu.matmul %26, %28, %cst_29 {dimension_numbers = #tpu.dot_dimension_numbers<[1], [0], [0], [1], [0, 0, 1, 1], [], []>} : vector<2x32xf32>, vector<32x32xf32>, vector<2x32xf32> -> vector<2x32xf32>
      %30 = arith.addf %29, %22 : vector<2x32xf32>
      %c0_30 = arith.constant 0 : index
      %c0_31 = arith.constant 0 : index
      %31 = vector.load %arg9[%c0_30, %c0_31] : memref<2x32xf32, #tpu.memory_space<vmem>>, vector<2x32xf32>
      tpu.vector_store %arg9[%c0_30, %c0_31], %30 {strides = array<i32>} : memref<2x32xf32, #tpu.memory_space<vmem>>, vector<2x32xf32>,
    } else {
    }
    %c0 = arith.constant 0 : index
    %c0_1 = arith.constant 0 : index
    %3 = vector.load %arg9[%c0, %c0_1] : memref<2x32xf32, #tpu.memory_space<vmem>>, vector<2x32xf32>
    %c0_2 = arith.constant 0 : index
    %c0_3 = arith.constant 0 : index
    %c0_4 = arith.constant 0 : index
    %4 = vector.load %arg5[%c0_2, %c0_3, %c0_4] : memref<1x32x64xf32, #tpu.memory_space<vmem>>, vector<1x32x64xf32>
    %5 = vector.shape_cast %4 : vector<1x32x64xf32> to vector<32x64xf32>
    %cst = arith.constant dense<0.000000e+00> : vector<2x64xf32>
    %6 = tpu.matmul %3, %5, %cst {dimension_numbers = #tpu.dot_dimension_numbers<[1], [0], [0], [1], [0, 0, 1, 1], [], []>} : vector<2x32xf32>, vector<32x64xf32>, vector<2x64xf32> -> vector<2x64xf32>
    %c0_5 = arith.constant 0 : index
    %c0_6 = arith.constant 0 : index
    %c0_7 = arith.constant 0 : index
    %7 = vector.load %arg6[%c0_5, %c0_6, %c0_7] : memref<1x1x64xf32, #tpu.memory_space<vmem>>, vector<1x1x64xf32>
    %8 = vector.shape_cast %7 : vector<1x1x64xf32> to vector<1x64xf32>
    %9 = vector.broadcast %8 : vector<1x64xf32> to vector<2x64xf32>
    %10 = arith.addf %6, %9 : vector<2x64xf32>
    %cst_8 = arith.constant 0.000000e+00 : f32
    %11 = vector.broadcast %cst_8 : f32 to vector<2x64xf32>
    %12 = arith.maximumf %10, %11 : vector<2x64xf32>
    %c0_9 = arith.constant 0 : index
    %c0_10 = arith.constant 0 : index
    %c0_11 = arith.constant 0 : index
    %13 = vector.load %arg7[%c0_9, %c0_10, %c0_11] : memref<1x64x32xf32, #tpu.memory_space<vmem>>, vector<1x64x32xf32>
    %14 = vector.shape_cast %13 : vector<1x64x32xf32> to vector<64x32xf32>
    %cst_12 = arith.constant dense<0.000000e+00> : vector<2x32xf32>
    %15 = tpu.matmul %12, %14, %cst_12 {dimension_numbers = #tpu.dot_dimension_numbers<[1], [0], [0], [1], [0, 0, 1, 1], [], []>} : vector<2x64xf32>, vector<64x32xf32>, vector<2x32xf32> -> vector<2x32xf32>
    %c0_13 = arith.constant 0 : index
    %c0_14 = arith.constant 0 : index
    %c0_15 = arith.constant 0 : index
    %16 = vector.load %arg8[%c0_13, %c0_14, %c0_15] : memref<1x1x32xf32, #tpu.memory_space<vmem>>, vector<1x1x32xf32>
    %17 = vector.shape_cast %16 : vector<1x1x32xf32> to vector<1x32xf32>
    %18 = vector.broadcast %17 : vector<1x32xf32> to vector<2x32xf32>
    %19 = arith.addf %15, %18 : vector<2x32xf32>
    %20 = arith.addf %19, %3 : vector<2x32xf32>
    %c0_16 = arith.constant 0 : index
    %c0_17 = arith.constant 0 : index
    %21 = vector.load %arg9[%c0_16, %c0_17] : memref<2x32xf32, #tpu.memory_space<vmem>>, vector<2x32xf32>
    tpu.vector_store %arg9[%c0_16, %c0_17], %20 {strides = array<i32>} : memref<2x32xf32, #tpu.memory_space<vmem>>, vector<2x32xf32>,
    return
  }
  func.func @transform_0(%arg0: i32) -> (i32, i32) {
    %c0_i32 = arith.constant 0 : i32
    %c0_i32_0 = arith.constant 0 : i32
    %c0_i32_1 = arith.constant 0 : i32
    return %c0_i32, %c0_i32_0 : i32, i32
  }
  func.func @transform_1(%arg0: i32) -> (i32, i32) {
    %c0_i32 = arith.constant 0 : i32
    %c0_i32_0 = arith.constant 0 : i32
    %c0_i32_1 = arith.constant 0 : i32
    return %c0_i32, %c0_i32_0 : i32, i32
  }
  func.func @transform_2(%arg0: i32) -> (i32, i32, i32) {
    %c0_i32 = arith.constant 0 : i32
    %c0_i32_0 = arith.constant 0 : i32
    %c0_i32_1 = arith.constant 0 : i32
    return %arg0, %c0_i32, %c0_i32_0 : i32, i32, i32
  }
  func.func @transform_3(%arg0: i32) -> (i32, i32, i32) {
    %c0_i32 = arith.constant 0 : i32
    %c0_i32_0 = arith.constant 0 : i32
    %c0_i32_1 = arith.constant 0 : i32
    return %arg0, %c0_i32, %c0_i32_0 : i32, i32, i32
  }
  func.func @transform_4(%arg0: i32) -> (i32, i32, i32) {
    %c0_i32 = arith.constant 0 : i32
    %c0_i32_0 = arith.constant 0 : i32
    %c0_i32_1 = arith.constant 0 : i32
    return %arg0, %c0_i32, %c0_i32_0 : i32, i32, i32
  }
  func.func @transform_5(%arg0: i32) -> (i32, i32, i32) {
    %c0_i32 = arith.constant 0 : i32
    %c0_i32_0 = arith.constant 0 : i32
    %c0_i32_1 = arith.constant 0 : i32
    return %arg0, %c0_i32, %c0_i32_0 : i32, i32, i32
  }
  func.func @transform_6(%arg0: i32) -> (i32, i32, i32) {
    %c0_i32 = arith.constant 0 : i32
    %c0_i32_0 = arith.constant 0 : i32
    %c0_i32_1 = arith.constant 0 : i32
    return %arg0, %c0_i32, %c0_i32_0 : i32, i32, i32
  }
  func.func @transform_7(%arg0: i32) -> (i32, i32, i32) {
    %c0_i32 = arith.constant 0 : i32
    %c0_i32_0 = arith.constant 0 : i32
    %c0_i32_1 = arith.constant 0 : i32
    return %arg0, %c0_i32, %c0_i32_0 : i32, i32, i32
  }
  func.func @transform_8(%arg0: i32) -> (i32, i32) {
    %c0_i32 = arith.constant 0 : i32
    %c0_i32_0 = arith.constant 0 : i32
    %c0_i32_1 = arith.constant 0 : i32
    return %c0_i32, %c0_i32_0 : i32, i32
  }
}

</mosaic_0001>

<bundles_post_ra>
// kernel: tpu_custom_call.1
= control target key start
LH: loop header
LB: loop body
LE: loop exit
PB: predicated region body
PF: predicated region fallthrough
CT: control target
= control target key end

     0   :  { %13 = vsyncpa [#allocation3], 0  ;;  %s1266_s0 = inlined_call_operand.hbm [shape: f32[2,32], index: 0, kind: input, shape index: {}]   ;;  %s1267_s1 = inlined_call_operand.vmem [shape: f32[2,32], index: 1, kind: input, shape index: {}]   ;;  %s1268_s2 = inlined_call_operand.vmem [shape: f32[2,32,32], index: 2, kind: input, shape index: {}]   ;;  %s1269_s3 = inlined_call_operand.vmem [shape: f32[2,32,32], index: 3, kind: input, shape index: {}]   ;;  %s1270_s4 = inlined_call_operand.vmem [shape: f32[2,32,64], index: 4, kind: input, shape index: {}]   ;;  %s1271_s5 = inlined_call_operand.vmem [shape: f32[2,1,64], index: 5, kind: input, shape index: {}]   ;;  %s1272_s6 = inlined_call_operand.vmem [shape: f32[2,64,32], index: 6, kind: input, shape index: {}]   ;;  %s1273_s7 = inlined_call_operand.vmem [shape: f32[2,1,32], index: 7, kind: input, shape index: {}]   ;;  %s1274_s8 = inlined_call_operand.hbm [shape: f32[2,32], index: 8, kind: output, shape index: {}]  }
   0x1   :  { %14 = vsyncpa [#allocation4], 0  ;;  %s1137_s27 = smov 0  }
   0x2 LB: > { %s1143_s28 = sadd.s32 4294967295, %s1082_s27   ;;  %p848_p0 = scmp.ge.s32.totalorder %s1082_s27, 1  ;;  %s1082_s27 = sphi %s1137_s27, %s20_s27  }
   0x3   : > { %p244_p1 = scmp.lt.s32.totalorder %s1082_s27, 3  ;;  %p1275_p4 = scmp.eq.s32.totalorder %s1143_s28, 0 }
   0x4   : > { %s1084_s30 = smov [#allocation2]   ;;  %s1014_s13 = scalar_lea.hbm %s1266_s0, 32 }
   0x5   : > { %p1148_p3 = pnand %p848_p0, %p244_p1  ;;  %s257_s9 = sshll.u32 %s1084_s30, 4  ;;  %s258_s9 = int_to_ptr.vmem [resolvable:$true] %s257_s9 }
   0x6   : > { %p1015_p7 = scmp.ne.s32.totalorder %s1266_s0, %s1014_s13  ;;  %p1021_p11 = scmp.lt.u32.totalorder %s1014_s13, %s1266_s0 }
   0x7   : > { %s1277_s29 = scalar_select %p1148_p3, 1, 0 }
   0x8   : > { %p990_p5 = pneg %p1148_p3 }
   0xa   : > { %p1157_p6 = pnand %p1275_p4, %p990_p5 }
   0xc   : > { %p1016_p8 = pneg %p1157_p6 }
   0xe   : > { %p1017_p9 = pnand %p1016_p8, %p1015_p7 }
  0x10   : > { %p1018_p10 = pneg %p1017_p9 }
  0x12   : > { %p1023_p12 = pnand %p1021_p11, %p1018_p10 }
  0x14   : > { %1026 = shalt.err (!%p1023_p12)
}
  0x15   : > { %s1027_s18 = scalar_lea.vmem %s258_s9, 32  ;;  %p1035_p5 = scmp.lt.s32.totalorder %s258_s9, %s258_s9 }
  0x16   : > { %p1028_p13 = scmp.ne.s32.totalorder %s258_s9, %s1027_s18  ;;  %p1036_p2 = scmp.lt.s32.totalorder %s1027_s18, %s1027_s18 }
  0x18   : > { %p1030_p0 = pnand %p1028_p13, %p1016_p8  ;;  %p1037_p4 = por %p1036_p2, %p1035_p5 }
  0x1a   : > { %p1031_p1 = pneg %p1030_p0 }
  0x1c   : > { %p1038_p3 = pnand %p1037_p4, %p1031_p1 }
  0x1e   : > { %1041 = shalt.err (!%p1038_p3)
}
  0x1f   : > { %993 = dma.hbm_to_vmem [thread:$0]  (!%p1157_p6), %s1266_s0, 32, %s258_s9, [#allocation3]  }
  0x20   : > { %p1279_p7 = scmp.ne.s32.totalorder %s1277_s29, 0 }
  0x21   : > { %p1280_p9 = scmp.eq.s32.totalorder (!%p1279_p7), %s1143_s28, 0 }
  0x22   : > { %317 = sbr.rel (%p1279_p7) target bundleno = 942 (0x3ae), region = 52 }
  0x29   : > { %1073 = dma.done.wait (%p1280_p9), [#allocation3], 32   ;;  %p1281_p8 = pmov %p1280_p9 }
  0x2a   : > { %p367_p2 = scmp.lt.s32.totalorder %s1143_s28, 1  ;;  %p1282_p3 = scmp.ne.s32.totalorder %s1143_s28, 0 }
  0x2b   : > { %1075 = vsyncadd (%p1281_p8), [#allocation3], 4294967264  ;;  %v1085_v3 = vmov (!%p1282_p3), 0.0|0.0   ;;  %vm1086_vm0 = vmmov (!%p1282_p3), 0   ;;  %v1087_v6 = vmov (!%p1282_p3), 0.0   ;;  %vm403_vm1 = vcmask (!%p1282_p3), 261120  }
  0x2c   : > { %s1185_s21 = scalar_select %p367_p2, %s1143_s28, 1 }
  0x2d   : > { %396 = sbr.rel (%p1282_p3) target bundleno = 485 (0x1e5), region = 60  ;;  %952 = vmatprep.subr.bf16.mxu0 (!%p1282_p3), %v1085_v3  ;;  %908 = vmatprep.mubr.msk.f32.mxu0 (!%p1282_p3), %vm1086_vm0, %v1087_v6  ;;  %v398_v14 = vld [vmem:[%s1267_s1] sm:$0x3] (!%p1282_p3)  ;;  %vm554_vm2 = vcmask (!%p1282_p3), 254976  }
  0x2e   : > { %s872_s22 = sshll.u32 %s1185_s21, 5  ;;  %s384_s25 = scalar_lea.vmem %s1271_s5, %s1185_s21  ;;  %958 = vmatprep.subr.bf16.mxu1 (!%p1282_p3), %v1085_v3  ;;  %919 = vmatprep.mubr.msk.f32.mxu1 (!%p1282_p3), %vm1086_vm0, %v1087_v6  ;;  %v397_v17 = vld [vmem:[#allocation2] sm:$0x3] (!%p1282_p3) }
  0x2f   : > { %s371_s30 = scalar_lea.vmem %s1268_s2, %s872_s22  ;;  %s376_s11 = scalar_lea.vmem %s1269_s3, %s872_s22 }
  0x30   : > { %s1201_s14 = scalar_lea.vmem %s1270_s4, %s872_s22  ;;  %s875_s15 = sshll.u32 %s1185_s21, 6  ;;  %v399_v0 = vld [vmem:[%s371_s30] sm:$0xff] (!%p1282_p3)  ;;  %v400_v1 = vld [vmem:[%s371_s30 + $0x8] sm:$0xff] (!%p1282_p3)  ;;  %v401_v2 = vld [vmem:[%s371_s30 + $0x10] sm:$0xff] (!%p1282_p3) }
  0x31   : > { %s1207_s18 = scalar_lea.vmem %s1272_s6, %s875_s15  ;;  %s392_s23 = scalar_lea.vmem %s1273_s7, %s1185_s21  ;;  %v953_v4 = vpack.c.bf16 (!%p1282_p3), %v400_v1, %v399_v0  ;;  %v402_v5 = vld [vmem:[%s371_s30 + $0x18] sm:$0xff] (!%p1282_p3)  ;;  %v477_v7 = vld [vmem:[%s376_s11] sm:$0xff] (!%p1282_p3)  ;;  %v478_v8 = vld [vmem:[%s376_s11 + $0x8] sm:$0xff] (!%p1282_p3) }
  0x32   : > { %v479_v9 = vld [vmem:[%s376_s11 + $0x10] sm:$0xff] (!%p1282_p3)  ;;  %v480_v10 = vld [vmem:[%s376_s11 + $0x18] sm:$0xff] (!%p1282_p3)  ;;  %v956_v11 = vpack.c.bf16 (!%p1282_p3), %v402_v5, %v401_v2  ;;  %v959_v12 = vpack.c.bf16 (!%p1282_p3), %v478_v8, %v477_v7 }
  0x33   : > { %954 = vmatpush3.bf16.msra.mxu0 (!%p1282_p3), %v953_v4  ;;  %v962_v13 = vpack.c.bf16 (!%p1282_p3), %v480_v10, %v479_v9 }
  0x34   : > { %955 = vmatprep.subr.bf16.mxu0 %v1085_v3  ;;  %960 = vmatpush3.bf16.msra.mxu1 %v959_v12 }
  0x35   : > { %961 = vmatprep.subr.bf16.mxu1 %v1085_v3 }
  0x37   : > { %957 = vmatpush3.bf16.msra.mxu0 %v956_v11 }
  0x38   : > { %963 = vmatpush3.bf16.msra.mxu1 %v962_v13 }
  0x3a   : > { %909 = vmatmul.mubr.msk.f32.vlgmr.msra.gmra.mrb[0].mxu0 %vm403_vm1, %v398_v14 }
 0x10d   : > { %v473_v15 = vpop.f32.mrb[0].mxu0 }
 0x10e   : > { %v910_v16 = vpop.f32.mrb[1].mxu0  ;;  %920 = vmatmul.mubr.msk.f32.vlgmr.msra.gmra.mrb[0].mxu1 %vm403_vm1, %v473_v15 }
 0x1e1   : > { %v550_v18 = vpop.f32.mrb[0].mxu1 }
 0x1e2   : > { %v551_v19 = vadd.f32 %v550_v18, %v397_v17  ;;  %v921_v20 = vpop.f32.mrb[1].mxu1 }
 0x1e4   : > { %555 = vst.msk [vmem:[#allocation5] sm:$0x3] %vm554_vm2, %v551_v19 }
 0x1e5 PF: > { %v557_v21 = vld [vmem:[%s1201_s14] sm:$0xff]  ;;  %v558_v22 = vld [vmem:[%s1201_s14 + $0x8] sm:$0xff]  ;;  %v559_v23 = vld [vmem:[%s1201_s14 + $0x10] sm:$0xff]  ;;  %v1088_v24 = vmov 0.0|0.0   ;;  %vm1089_vm3 = vmmov 0   ;;  %v1090_v27 = vmov 0.0  }
 0x1e6   : > { %964 = vmatprep.subr.bf16.mxu0 %v1088_v24  ;;  %v965_v25 = vpack.c.bf16 %v558_v22, %v557_v21  ;;  %v560_v26 = vld [vmem:[%s1201_s14 + $0x18] sm:$0xff]  ;;  %930 = vmatprep.mubr.msk.f32.mxu0 %vm1089_vm3, %v1090_v27  ;;  %v643_v28 = vld [vmem:[%s1207_s18] sm:$0xff]  ;;  %v644_v29 = vld [vmem:[%s1207_s18 + $0x8] sm:$0xff]  ;;  %vm568_vm4 = vcmask 261120   ;;  %vm658_vm5 = vcmask 523264   ;;  %s1091_s10 = smov [#allocation5]  }
 0x1e7   : > { %970 = vmatprep.subr.bf16.mxu1 %v1088_v24  ;;  %v645_v30 = vld [vmem:[%s1207_s18 + $0x10] sm:$0xff]  ;;  %v646_v31 = vld [vmem:[%s1207_s18 + $0x18] sm:$0xff]  ;;  %949 = vmatprep.mubr.msk.f32.mxu1 %vm1089_vm3, %v1090_v27  ;;  %v968_v32 = vpack.c.bf16 %v560_v26, %v559_v23  ;;  %v971_v33 = vpack.c.bf16 %v644_v29, %v643_v28  ;;  %v647_v35 = vld [vmem:[%s1207_s18 + $0x20] sm:$0xff]  ;;  %s742_s11 = sshll.u32 %s1091_s10, 4  ;;  %vm733_vm6 = vcmask 254976   ;;  %p996_p4 = scmp.eq.s32.totalorder %s1143_s28, 1  ;;  %s743_s11 = int_to_ptr.vmem [resolvable:$true] %s742_s11 }
 0x1e8   : > { %966 = vmatpush3.bf16.msra.mxu0 %v965_v25  ;;  %v974_v34 = vpack.c.bf16 %v646_v31, %v645_v30  ;;  %v648_v36 = vld [vmem:[%s1207_s18 + $0x28] sm:$0xff]  ;;  %v649_v39 = vld [vmem:[%s1207_s18 + $0x30] sm:$0xff]  ;;  %v650_v40 = vld [vmem:[%s1207_s18 + $0x38] sm:$0xff]  ;;  %p1049_p12 = scmp.lt.s32.totalorder %s743_s11, %s743_s11 }
 0x1e9   : > { %967 = vmatprep.subr.bf16.mxu0 %v1088_v24  ;;  %972 = vmatpush3.bf16.msra.mxu1 %v971_v33  ;;  %v977_v38 = vpack.c.bf16 %v648_v36, %v647_v35  ;;  %v980_v41 = vpack.c.bf16 %v650_v40, %v649_v39  ;;  %v864_v42 = vld [vmem:[%s384_s25] ss:$0 sm:$0xff]  ;;  %s1042_s25 = scalar_lea.vmem %s743_s11, 32 }
 0x1ea   : > { %973 = vmatprep.subr.bf16.mxu1 %v1088_v24  ;;  %v866_v47 = vld [vmem:[%s392_s23] ss:$0 sm:$0xff]  ;;  %p1043_p6 = scmp.ne.s32.totalorder %s743_s11, %s1042_s25  ;;  %p1050_p13 = scmp.lt.s32.totalorder %s1042_s25, %s1042_s25 }
 0x1eb   : > { %v556_v37 = vld [vmem:[#allocation5] sm:$0x3] }
 0x1ec   : > { %969 = vmatpush3.bf16.msra.mxu0 %v968_v32  ;;  %p1044_p10 = pnand %p1043_p6, %p996_p4  ;;  %p1051_p0 = por %p1050_p13, %p1049_p12 }
 0x1ed   : > { %975 = vmatpush3.bf16.msra.mxu1 %v974_v34 }
 0x1ee   : > { %976 = vmatprep.subr.bf16.mxu1 %v1088_v24  ;;  %p1045_p11 = pneg %p1044_p10 }
 0x1ef   : > { %931 = vmatmul.mubr.msk.f32.vlgmr.msra.gmra.mrb[0].mxu0 %vm568_vm4, %v556_v37 }
 0x1f0   : > { %p1052_p1 = pnand %p1051_p0, %p1045_p11 }
 0x1f1   : > { %978 = vmatpush3.bf16.msra.mxu1 %v977_v38 }
 0x1f2   : > { %979 = vmatprep.subr.bf16.mxu1 %v1088_v24 }
 0x1f5   : > { %981 = vmatpush3.bf16.msra.mxu1 %v980_v41 }
 0x2c2   : > { %v638_v43 = vpop.f32.mrb[0].mxu0 }
 0x2c3   : > { %v639_v44 = vadd.f32 %v864_v42, %v638_v43  ;;  %v932_v45 = vpop.f32.mrb[1].mxu0 }
 0x2c5   : > { %v642_v46 = vmax.f32 %v639_v44, 0.0 }
 0x2c7   : > { %950 = vmatmul.mubr.msk.f32.vlgmr.msra.gmra.mrb[0].mxu1 %vm658_vm5, %v642_v46 }
 0x39a   : > { %v728_v48 = vpop.f32.mrb[0].mxu1 }
 0x39b   : > { %v729_v49 = vadd.f32 %v866_v47, %v728_v48  ;;  %v951_v50 = vpop.f32.mrb[1].mxu1 }
 0x39d   : > { %v732_v51 = vadd.f32 %v729_v49, %v556_v37 }
 0x39f   : > { %734 = vst.msk [vmem:[#allocation5] sm:$0x3] %vm733_vm6, %v732_v51 }
 0x3a0   : > { %1055 = shalt.err (!%p1052_p1)
}
 0x3a1   : > { %s1056_s13 = scalar_lea.hbm %s1274_s8, 32 }
 0x3a2   : > { %p1057_p5 = scmp.ne.s32.totalorder %s1274_s8, %s1056_s13  ;;  %p1062_p8 = scmp.lt.u32.totalorder %s1056_s13, %s1274_s8 }
 0x3a4   : > { %p1058_p7 = pnand %p1057_p5, %p996_p4 }
 0x3a6   : > { %p1059_p9 = pneg %p1058_p7 }
 0x3a8   : > { %p1064_p2 = pnand %p1062_p8, %p1059_p9 }
 0x3aa   : > { %1067 = shalt.err (!%p1064_p2)
}
 0x3ab   : > { %987 = dma.vmem_to_hbm [thread:$0]  (%p996_p4), %s743_s11, 32, %s1274_s8, [#allocation4]  }
 0x3ac   : > { %1077 = dma.done.wait (%p996_p4), [#allocation4], 32  }
 0x3ad   : > { %1079 = vsyncadd (%p996_p4), [#allocation4], 4294967264 }
 0x3ae PF: > { %s20_s27 = sadd.s32 1, %s1082_s27  }
 0x3af   : > { %p17_p3 = scmp.ge.s32.totalorder %s20_s27, 4  }
 0x3b1   :  { %19 = sbr.rel (!%p17_p3) target bundleno = 2 (0x2), region = 103 }
 0x3b8   :  { %755 = vsyncpa [#allocation3], 1 }
 0x3b9   :  { %757 = vsyncpa [#allocation3 + $0x1], 1 }
 0x3ba   :  { %758 = vsyncpa [#allocation4], 1 }
 0x3bb   :  { %760 = vsyncpa [#allocation4 + $0x1], 1 }

</bundles_post_ra>
